<compile_context>
chip_gen: v6e
topology: v6e:2x2x1
jax: 0.10.0
libtpu: 0.0.40
codegen_flags: <defaults>
</compile_context>

<pallas_src>
import functools

import jax
import jax.numpy as jnp
from jax.experimental import pallas as pl
from jax.experimental.pallas import tpu as pltpu


def _round_up(v, m):
    return ((v + m - 1) // m) * m


def _choose_tn(n, tn):
    """Lane-aligned batch tile: large enough to amortize per-grid-step overhead, but split so
    that >=2 tiles exist when possible (v7x has two TensorCores)."""
    n128 = _round_up(max(n, 1), 128)               # lane-aligned batch extent
    tn = _round_up(min(max(tn, 128), n128), 128)   # clamp + 128-align any user-supplied tn
    if n128 > 128 and n128 // tn < 2:
        tn = _round_up(-(-n128 // 2), 128)         # split roughly in half, lane aligned
    return tn


def _pad_to_tiles(xT, tn):
    """Pad the batch (lane) axis of xT:(2, N) out to a whole number of tiles."""
    n = xT.shape[1]
    tn = _choose_tn(n, tn)
    padded_n = _round_up(max(n, 1), tn)
    if padded_n != n:
        xT = jnp.pad(xT, ((0, 0), (0, padded_n - n)))
    return xT, n, tn, padded_n


def _mlp_T(x, w1c0, w1c1, b1, w2, b2, w3, b3):
    """net(x) in transposed (feature-major, batch-on-lanes) layout.

    x: (2, TN) f32.  Layer 1 (K=2) = two lane-wide VPU FMAs; layers 2/3 = MXU matmuls with
    bf16 operands and f32 accumulation.  Returns (2, TN) f32.
    """
    h1 = jnp.tanh(w1c0 * x[0:1, :] + w1c1 * x[1:2, :] + b1)                      # (64, TN)
    h2 = jnp.tanh(
        jnp.dot(w2, h1.astype(jnp.bfloat16), preferred_element_type=jnp.float32) + b2
    )                                                                             # (64, TN)
    return jnp.dot(w3, h2.astype(jnp.bfloat16),
                   preferred_element_type=jnp.float32) + b3                       # (2, TN)


def _odefunc_kernel(xT_ref, p_ref, w2_ref, w3_ref, b3_ref, oT_ref):
    # xT_ref: (2, TN) f32    p_ref: (64, 4) f32 = [w1[:,0] | w1[:,1] | b1 | b2]
    # w2_ref: (64, 64) bf16  w3_ref: (2, 64) bf16  b3_ref: (2, 1) f32  oT_ref: (2, TN) f32
    p = p_ref[...]
    oT_ref[...] = _mlp_T(xT_ref[...], p[:, 0:1], p[:, 1:2], p[:, 2:3],
                         w2_ref[...], p[:, 3:4], w3_ref[...], b3_ref[...])


def _odefunc_rk4_kernel(xT_ref, p_ref, w2_ref, w3_ref, b3_ref, oT_ref, state_ref,
                        *, num_steps, dt):
    """Fused fixed-step RK4 rollout: all stage evaluations of all steps in one pallas_call.

    State stays in VMEM for the whole trajectory; HBM sees only the initial read and the final
    write, and weights are loaded once per tile (removes per-evaluation launch, transpose/pad,
    weight DMA and state round-trip costs)."""
    # Hoist loop-invariant parameter loads / slices out of the time loop.
    p = p_ref[...]
    w1c0, w1c1, b1, b2 = p[:, 0:1], p[:, 1:2], p[:, 2:3], p[:, 3:4]
    w2, w3, b3 = w2_ref[...], w3_ref[...], b3_ref[...]

    def f(x):
        return _mlp_T(x, w1c0, w1c1, b1, w2, b2, w3, b3)

    state_ref[...] = xT_ref[...]

    @pl.loop(0, num_steps)
    def _(step):
        x = state_ref[...]
        k1 = f(x)
        k2 = f(x + (0.5 * dt) * k1)
        k3 = f(x + (0.5 * dt) * k2)
        k4 = f(x + dt * k3)
        state_ref[...] = x + (dt / 6.0) * (k1 + 2.0 * k2 + 2.0 * k3 + k4)

    oT_ref[...] = state_ref[...]


def pack_params(params):
    """One-time repack of the Linear weights into the kernel layout.

    Returns (p, w2_bf, w3_bf, b3):
      p     (64, 4) f32  = [w1[:,0] | w1[:,1] | b1 | b2]  (one VMEM tile instead of four)
      w2_bf (64, 64) bf16
      w3_bf (2, 64)  bf16  (pre-transposed so layer 3 is a plain MXU matmul)
      b3    (2, 1)   f32
    """
    w1t, b1, w2t, b2, w3c, b3 = params
    p = jnp.concatenate([w1t, b1, b2], axis=1).astype(jnp.float32)
    return (p, w2t.astype(jnp.bfloat16), jnp.transpose(w3c).astype(jnp.bfloat16),
            b3.astype(jnp.float32))


_VMEM_LIMIT = 24 * 1024 * 1024  # scales with tn=4096 tiles; well under v7x's 64 MiB per-TC VMEM


def odefunc_forward_T(t, xT, packed_params, *, tn=4096):
    """dx/dt in lane-major layout: xT (2, N) f32 -> (2, N) f32.

    Preferred entry point inside a solver loop: keeping batch on the lane axis end-to-end avoids
    the (N,2)<->(2,N) strided HBM transposes on every evaluation."""
    del t  # unused, as in ODEFunc.forward
    p, w2_bf, w3_bf, b3 = packed_params
    xT, n, tn, padded_n = _pad_to_tiles(jnp.asarray(xT, jnp.float32), tn)
    const = lambda s: pl.BlockSpec(s, lambda i: (0, 0))  # VMEM-resident weights/biases

    outT = pl.pallas_call(
        _odefunc_kernel,
        out_shape=jax.ShapeDtypeStruct((2, padded_n), jnp.float32),
        grid=(padded_n // tn,),
        in_specs=[
            pl.BlockSpec((2, tn), lambda i: (0, i)),  # x^T tile: lane-dense batch slab
            const(p.shape), const(w2_bf.shape), const(w3_bf.shape), const(b3.shape),
        ],
        out_specs=pl.BlockSpec((2, tn), lambda i: (0, i)),
        compiler_params=pltpu.CompilerParams(
            dimension_semantics=("parallel",),        # shard batch tiles across TCs (v7x)
            vmem_limit_bytes=_VMEM_LIMIT,
        ),
    )(xT, p, w2_bf, w3_bf, b3)
    return outT[:, :n]


def odefunc_forward(t, x, packed_params, *, tn=4096):
    """Drop-in ODEFunc.forward(t, x): x (N, 2) -> (N, 2).

    Thin transpose shim over the lane-major kernel; use odefunc_forward_T /
    odefunc_integrate_rk4 inside hot solver loops to avoid the boundary transposes."""
    return odefunc_forward_T(t, jnp.asarray(x, jnp.float32).T, packed_params, tn=tn).T


def odefunc_integrate_rk4(x0, packed_params, *, dt, num_steps, tn=4096):
    """Fused fixed-step RK4 rollout of dx/dt = net(x): x0 (N, 2) -> x(num_steps*dt) (N, 2)."""
    p, w2_bf, w3_bf, b3 = packed_params
    xT, n, tn, padded_n = _pad_to_tiles(jnp.asarray(x0, jnp.float32).T, tn)
    const = lambda s: pl.BlockSpec(s, lambda i: (0, 0))
    kernel = functools.partial(_odefunc_rk4_kernel, num_steps=int(num_steps), dt=float(dt))

    outT = pl.pallas_call(
        kernel,
        out_shape=jax.ShapeDtypeStruct((2, padded_n), jnp.float32),
        grid=(padded_n // tn,),
        in_specs=[
            pl.BlockSpec((2, tn), lambda i: (0, i)),
            const(p.shape), const(w2_bf.shape), const(w3_bf.shape), const(b3.shape),
        ],
        out_specs=pl.BlockSpec((2, tn), lambda i: (0, i)),
        scratch_shapes=[pltpu.VMEM((2, tn), jnp.float32)],   # VMEM-resident ODE state
        compiler_params=pltpu.CompilerParams(
            dimension_semantics=("parallel",),
            vmem_limit_bytes=_VMEM_LIMIT,
        ),
    )(xT, p, w2_bf, w3_bf, b3)
    return outT[:, :n].T


def init_params(key):
    """Deterministic init mimicking PyTorch nn.Linear default (uniform +/- 1/sqrt(fan_in)).

      w1t: (64, 2)  b1: (64, 1)   -- h1 = tanh(W1 x + b1)
      w2t: (64, 64) b2: (64, 1)   -- h2 = tanh(W2 h1 + b2)
      w3c: (64, 2)  b3: (2, 1)    -- y_k = sum_j w3c[j, k] * h2[j] + b3[k]
    """
    specs = [  # (fan_in, fan_out, weight_shape)
        (2, 64, (64, 2)),
        (64, 64, (64, 64)),
        (64, 2, (64, 2)),
    ]
    params = []
    for fan_in, fan_out, wshape in specs:
        key, kw, kb = jax.random.split(key, 3)
        bound = 1.0 / (fan_in ** 0.5)
        w = jax.random.uniform(kw, wshape, jnp.float32, -bound, bound)
        b = jax.random.uniform(kb, (fan_out, 1), jnp.float32, -bound, bound)
        params += [w, b]
    return tuple(params)


def _reference_forward(t, x, params):
    del t
    w1t, b1, w2t, b2, w3c, b3 = params
    h1 = jnp.tanh(x @ w1t.T + b1.T)
    h2 = jnp.tanh(h1 @ w2t.T + b2.T)
    return h2 @ w3c + b3.T


def _reference_rk4(x, params, dt, num_steps):
    def f(x):
        return _reference_forward(None, x, params)

    def step(x, _):
        k1 = f(x)
        k2 = f(x + 0.5 * dt * k1)
        k3 = f(x + 0.5 * dt * k2)
        k4 = f(x + dt * k3)
        return x + (dt / 6.0) * (k1 + 2.0 * k2 + 2.0 * k3 + k4), None

    x, _ = jax.lax.scan(step, x, None, length=num_steps)
    return x


if __name__ == "__main__":
    key = jax.random.PRNGKey(0)
    kp, kx = jax.random.split(key)
    params = init_params(kp)
    packed = pack_params(params)

    batch = 8
    x = jax.random.normal(kx, (batch, 2), jnp.float32)
    t = jnp.float32(0.0)

    # Single vector-field evaluation (matches ODEFunc.forward).  bf16 MXU operands with f32
    # accumulation -> compare against the f32 reference with a loosened tolerance.
    out = jax.block_until_ready(odefunc_forward(t, x, packed))
    ref = _reference_forward(t, x, params)
    assert out.shape == (batch, 2)
    assert jnp.allclose(out, ref, atol=2e-2, rtol=2e-2), "forward mismatch vs reference"

    # Fused RK4 rollout: 8 steps x 4 evaluations in ONE pallas_call (implements the old TODO).
    dt, num_steps = 0.05, 8
    traj = jax.block_until_ready(
        odefunc_integrate_rk4(x, packed, dt=dt, num_steps=num_steps))
    traj_ref = _reference_rk4(x, params, dt, num_steps)
    assert traj.shape == (batch, 2)
    assert jnp.allclose(traj, traj_ref, atol=3e-2, rtol=3e-2), "rk4 mismatch vs reference"

    print("KERNEL_OK")
</pallas_src>

<mosaic_0001>
module attributes {stable_mosaic.version = 11 : i64} {
  func.func @_odefunc_kernel(%arg0: i32, %arg1: memref<2x128xf32, #tpu.memory_space<vmem>>, %arg2: memref<64x4xf32, #tpu.memory_space<vmem>>, %arg3: memref<64x64xbf16, #tpu.memory_space<vmem>>, %arg4: memref<2x64xbf16, #tpu.memory_space<vmem>>, %arg5: memref<2x1xf32, #tpu.memory_space<vmem>>, %arg6: memref<2x128xf32, #tpu.memory_space<vmem>>) attributes {dimension_semantics = [#tpu.dimension_semantics<parallel>], iteration_bounds = array<i64: 1>, scalar_prefetch = 0 : i64, scratch_operands = 0 : i64, tpu.core_type = #tpu.core_type<tc>, window_params = [{transform_indices = @transform_0, window_bounds = array<i64: 2, 128>}, {pipeline_mode = #tpu.pipeline_mode<synchronous>, transform_indices = @transform_1, window_bounds = array<i64: 64, 4>}, {pipeline_mode = #tpu.pipeline_mode<synchronous>, transform_indices = @transform_2, window_bounds = array<i64: 64, 64>}, {pipeline_mode = #tpu.pipeline_mode<synchronous>, transform_indices = @transform_3, window_bounds = array<i64: 2, 64>}, {pipeline_mode = #tpu.pipeline_mode<synchronous>, transform_indices = @transform_4, window_bounds = array<i64: 2, 1>}, {transform_indices = @transform_5, window_bounds = array<i64: 2, 128>}]} {
    %c0 = arith.constant 0 : index
    %c0_0 = arith.constant 0 : index
    %0 = vector.load %arg2[%c0, %c0_0] : memref<64x4xf32, #tpu.memory_space<vmem>>, vector<64x4xf32>
    %c0_1 = arith.constant 0 : index
    %c0_2 = arith.constant 0 : index
    %1 = vector.load %arg1[%c0_1, %c0_2] : memref<2x128xf32, #tpu.memory_space<vmem>>, vector<2x128xf32>
    %2 = vector.extract_strided_slice %0 {offsets = [0, 0], sizes = [64, 1], strides = [1, 1]} : vector<64x4xf32> to vector<64x1xf32>
    %3 = vector.extract_strided_slice %0 {offsets = [0, 1], sizes = [64, 1], strides = [1, 1]} : vector<64x4xf32> to vector<64x1xf32>
    %4 = vector.extract_strided_slice %0 {offsets = [0, 2], sizes = [64, 1], strides = [1, 1]} : vector<64x4xf32> to vector<64x1xf32>
    %c0_3 = arith.constant 0 : index
    %c0_4 = arith.constant 0 : index
    %5 = vector.load %arg3[%c0_3, %c0_4] : memref<64x64xbf16, #tpu.memory_space<vmem>>, vector<64x64xbf16>
    %6 = vector.extract_strided_slice %0 {offsets = [0, 3], sizes = [64, 1], strides = [1, 1]} : vector<64x4xf32> to vector<64x1xf32>
    %c0_5 = arith.constant 0 : index
    %c0_6 = arith.constant 0 : index
    %7 = vector.load %arg4[%c0_5, %c0_6] : memref<2x64xbf16, #tpu.memory_space<vmem>>, vector<2x64xbf16>
    %c0_7 = arith.constant 0 : index
    %c0_8 = arith.constant 0 : index
    %8 = vector.load %arg5[%c0_7, %c0_8] : memref<2x1xf32, #tpu.memory_space<vmem>>, vector<2x1xf32>
    %9 = vector.extract_strided_slice %1 {offsets = [0, 0], sizes = [1, 128], strides = [1, 1]} : vector<2x128xf32> to vector<1x128xf32>
    %10 = vector.broadcast %2 : vector<64x1xf32> to vector<64x128xf32>
    %11 = vector.broadcast %9 : vector<1x128xf32> to vector<64x128xf32>
    %12 = arith.mulf %10, %11 : vector<64x128xf32>
    %13 = vector.extract_strided_slice %1 {offsets = [1, 0], sizes = [1, 128], strides = [1, 1]} : vector<2x128xf32> to vector<1x128xf32>
    %14 = vector.broadcast %3 : vector<64x1xf32> to vector<64x128xf32>
    %15 = vector.broadcast %13 : vector<1x128xf32> to vector<64x128xf32>
    %16 = arith.mulf %14, %15 : vector<64x128xf32>
    %17 = arith.addf %12, %16 : vector<64x128xf32>
    %18 = vector.broadcast %4 : vector<64x1xf32> to vector<64x128xf32>
    %19 = arith.addf %17, %18 : vector<64x128xf32>
    %20 = math.tanh %19 : vector<64x128xf32>
    %21 = arith.truncf %20 : vector<64x128xf32> to vector<64x128xbf16>
    %cst = arith.constant dense<0.000000e+00> : vector<64x128xf32>
    %22 = tpu.matmul %5, %21, %cst {dimension_numbers = #tpu.dot_dimension_numbers<[1], [0], [0], [1], [0, 0, 1, 1], [], []>} : vector<64x64xbf16>, vector<64x128xbf16>, vector<64x128xf32> -> vector<64x128xf32>
    %23 = vector.broadcast %6 : vector<64x1xf32> to vector<64x128xf32>
    %24 = arith.addf %22, %23 : vector<64x128xf32>
    %25 = math.tanh %24 : vector<64x128xf32>
    %26 = arith.truncf %25 : vector<64x128xf32> to vector<64x128xbf16>
    %cst_9 = arith.constant dense<0.000000e+00> : vector<2x128xf32>
    %27 = tpu.matmul %7, %26, %cst_9 {dimension_numbers = #tpu.dot_dimension_numbers<[1], [0], [0], [1], [0, 0, 1, 1], [], []>} : vector<2x64xbf16>, vector<64x128xbf16>, vector<2x128xf32> -> vector<2x128xf32>
    %28 = vector.broadcast %8 : vector<2x1xf32> to vector<2x128xf32>
    %29 = arith.addf %27, %28 : vector<2x128xf32>
    %c0_10 = arith.constant 0 : index
    %c0_11 = arith.constant 0 : index
    %30 = vector.load %arg6[%c0_10, %c0_11] : memref<2x128xf32, #tpu.memory_space<vmem>>, vector<2x128xf32>
    tpu.vector_store %arg6[%c0_10, %c0_11], %29 {strides = array<i32>} : memref<2x128xf32, #tpu.memory_space<vmem>>, vector<2x128xf32>,
    return
  }
  func.func @transform_0(%arg0: i32) -> (i32, i32) {
    %c0_i32 = arith.constant 0 : i32
    %c0_i32_0 = arith.constant 0 : i32
    return %c0_i32, %arg0 : i32, i32
  }
  func.func @transform_1(%arg0: i32) -> (i32, i32) {
    %c0_i32 = arith.constant 0 : i32
    %c0_i32_0 = arith.constant 0 : i32
    %c0_i32_1 = arith.constant 0 : i32
    return %c0_i32, %c0_i32_0 : i32, i32
  }
  func.func @transform_2(%arg0: i32) -> (i32, i32) {
    %c0_i32 = arith.constant 0 : i32
    %c0_i32_0 = arith.constant 0 : i32
    %c0_i32_1 = arith.constant 0 : i32
    return %c0_i32, %c0_i32_0 : i32, i32
  }
  func.func @transform_3(%arg0: i32) -> (i32, i32) {
    %c0_i32 = arith.constant 0 : i32
    %c0_i32_0 = arith.constant 0 : i32
    %c0_i32_1 = arith.constant 0 : i32
    return %c0_i32, %c0_i32_0 : i32, i32
  }
  func.func @transform_4(%arg0: i32) -> (i32, i32) {
    %c0_i32 = arith.constant 0 : i32
    %c0_i32_0 = arith.constant 0 : i32
    %c0_i32_1 = arith.constant 0 : i32
    return %c0_i32, %c0_i32_0 : i32, i32
  }
  func.func @transform_5(%arg0: i32) -> (i32, i32) {
    %c0_i32 = arith.constant 0 : i32
    %c0_i32_0 = arith.constant 0 : i32
    return %c0_i32, %arg0 : i32, i32
  }
}

</mosaic_0001>

<bundles_post_ra>
// kernel: tpu_custom_call.1
= control target key start
LH: loop header
LB: loop body
LE: loop exit
PB: predicated region body
PF: predicated region fallthrough
CT: control target
= control target key end

     0   :  { %v534_v1 = vmov 1   ;;  %v535_v2 = vmov 0   ;;  %s624_s0 = inlined_call_operand.vmem [shape: f32[2,128], index: 0, kind: input, shape index: {}]   ;;  %s625_s1 = inlined_call_operand.vmem [shape: f32[64,4], index: 1, kind: input, shape index: {}]   ;;  %s626_s2 = inlined_call_operand.vmem [shape: bf16[64,64], index: 2, kind: input, shape index: {}]   ;;  %s627_s3 = inlined_call_operand.vmem [shape: bf16[2,64], index: 3, kind: input, shape index: {}]   ;;  %s628_s4 = inlined_call_operand.vmem [shape: f32[2,1], index: 4, kind: input, shape index: {}]   ;;  %s629_s5 = inlined_call_operand.hbm [shape: f32[2,128], index: 5, kind: output, shape index: {}]  }
   0x1   :  { %v28_v0 = vld [vmem:[%s625_s1 + $0x30] sm:$0xff]  ;;  %460 = vset.pattern.permute.xlu1 %v534_v1  ;;  %459 = vset.pattern.permute.xlu0 %v535_v2  ;;  %v29_v3 = vld [vmem:[%s625_s1 + $0x38] sm:$0xff] }
   0x2   :  { %118 = vperm.xlu1 %460, %v28_v0   ;;  %73 = vperm.xlu0 %459, %v28_v0  }
   0x6   :  { %122 = vperm.xlu1 %460, %v29_v3   ;;  %78 = vperm.xlu0 %459, %v29_v3  }
   0x7   :  { %10 = vsyncpa [#allocation3], 0  ;;  %v26_v4 = vld [vmem:[%s625_s1 + $0x20] sm:$0xff]  ;;  %v27_v5 = vld [vmem:[%s625_s1 + $0x28] sm:$0xff]  ;;  %v536_v7 = vmov 2   ;;  %vm249_vm0 = vcmask 523264   ;;  %v81_v15 = vlaneseq }
   0x8   :  { %v24_v6 = vld [vmem:[%s625_s1 + $0x10] sm:$0xff]  ;;  %v22_v8 = vld [vmem:[%s625_s1] sm:$0xff]  ;;  %v25_v9 = vld [vmem:[%s625_s1 + $0x18] sm:$0xff]  ;;  %v537_v12 = vmov 3   ;;  %vm539_vm1 = vmmov 0   ;;  %s540_s19 = smov [#allocation2]  }
   0x9   :  { %v23_v10 = vld [vmem:[%s625_s1 + $0x8] sm:$0xff]  ;;  %v476_v11 = vld [vmem:[%s626_s2] sm:$0xff]   ;;  %v82_v18 = vshrl.u32 %v81_v15, 7  ;;  %s394_s20 = sshll.u32 %s540_s19, 4  ;;  %s395_s20 = int_to_ptr.vmem [resolvable:$true] %s394_s20 }
   0xa   :  { %461 = vset.pattern.permute.xlu1 %v535_v2  ;;  %63 = vperm.xlu0 %459, %v26_v4   ;;  %v30_v23 = vld [vmem:[%s624_s0] sm:$0x3]  ;;  %s512_s21 = scalar_lea.vmem %s395_s20, 32  ;;  %p517_p1 = scmp.lt.s32.totalorder %s395_s20, %s395_s20 }
   0xb   :  { %68 = vperm.xlu1 %461, %v27_v5   ;;  %432 = vmatprep.mubr.msk.bf16.mxu0 %vm249_vm0, %v476_v11  ;;  %v127_v21 = vsub.s32 1, %v82_v18  ;;  %v83_v22 = vsub.s32 0, %v82_v18  ;;  %p513_p0 = scmp.ne.s32.totalorder %s395_s20, %s512_s21  ;;  %p518_p2 = scmp.lt.s32.totalorder %s512_s21, %s512_s21 }
   0xd   :  { %v128_v25 = vrot.slane %v30_v23, %v127_v21  ;;  %v84_v26 = vrot.slane %v30_v23, %v83_v22  ;;  %p519_p3 = por %p518_p2, %p517_p1 }
   0xe   :  { %462 = vset.pattern.permute.xlu0 %v534_v1 }
   0xf   :  { %463 = vset.pattern.permute.xlu1 %v534_v1  ;;  %110 = vperm.xlu0 %462, %v26_v4   ;;  %p520_p4 = pnand %p519_p3, %p513_p0 }
  0x10   :  { %114 = vperm.xlu1 %463, %v27_v5  }
  0x13   :  { %102 = vperm.xlu0 %462, %v24_v6  }
  0x14   :  { %464 = vset.pattern.permute.xlu1 %v536_v7 }
  0x15   :  { %170 = vperm.xlu1 %464, %v28_v0  }
  0x17   :  { %94 = vperm.xlu0 %462, %v22_v8  }
  0x19   :  { %465 = vset.pattern.permute.xlu1 %v535_v2 }
  0x1a   :  { %53 = vperm.xlu1 %465, %v24_v6  }
  0x1b   :  { %469 = vset.pattern.permute.xlu0 %v536_v7 }
  0x1c   :  { %174 = vperm.xlu0 %469, %v29_v3  }
  0x1e   :  { %58 = vperm.xlu1 %465, %v25_v9  }
  0x20   :  { %166 = vperm.xlu0 %469, %v27_v5  }
  0x22   :  { %466 = vset.pattern.permute.xlu1 %v534_v1 }
  0x23   :  { %106 = vperm.xlu1 %466, %v25_v9  }
  0x24   :  { %158 = vperm.xlu0 %469, %v25_v9  }
  0x27   :  { %467 = vset.pattern.permute.xlu1 %v536_v7 }
  0x28   :  { %162 = vperm.xlu1 %467, %v26_v4   ;;  %472 = vset.pattern.permute.xlu0 %v537_v12 }
  0x29   :  { %222 = vperm.xlu0 %472, %v28_v0  }
  0x2c   :  { %468 = vset.pattern.permute.xlu1 %v535_v2 }
  0x2d   :  { %43 = vperm.xlu1 %468, %v22_v8   ;;  %218 = vperm.xlu0 %472, %v27_v5  }
  0x31   :  { %48 = vperm.xlu1 %468, %v23_v10   ;;  %210 = vperm.xlu0 %472, %v25_v9  }
  0x35   :  { %470 = vset.pattern.permute.xlu1 %v534_v1  ;;  %202 = vperm.xlu0 %472, %v23_v10  }
  0x36   :  { %98 = vperm.xlu1 %470, %v23_v10  }
  0x39   :  { %475 = vset.pattern.permute.xlu0 %v535_v2 }
  0x3a   :  { %471 = vset.pattern.permute.xlu1 %v536_v7 }
  0x3b   :  { %154 = vperm.xlu1 %471, %v24_v6  }
  0x3f   :  { %146 = vperm.xlu1 %471, %v22_v8  }
  0x43   :  { %150 = vperm.xlu1 %471, %v23_v10  }
  0x47   :  { %473 = vset.pattern.permute.xlu1 %v537_v12 }
  0x48   :  { %226 = vperm.xlu1 %473, %v29_v3  }
  0x4c   :  { %214 = vperm.xlu1 %473, %v26_v4  }
  0x50   :  { %206 = vperm.xlu1 %473, %v24_v6  }
  0x54   :  { %198 = vperm.xlu1 %473, %v22_v8  }
  0x58   :  { %474 = vset.pattern.permute.xlu1 %v535_v2 }
  0x7d   :  { %v119_v13 = vpop.permute.xlu1 %118  ;;  %v74_v14 = vpop.permute.xlu0 %73 }
  0x7e   :  { %v135_v29 = vmul.f32 %v128_v25, %v119_v13  ;;  %v91_v30 = vmul.f32 %v84_v26, %v74_v14 }
  0x80   :  { %v143_v35 = vadd.f32 %v135_v29, %v91_v30 }
  0x81   :  { %v123_v16 = vpop.permute.xlu1 %122  ;;  %v79_v17 = vpop.permute.xlu0 %78 }
  0x82   :  { %v136_v32 = vmul.f32 %v128_v25, %v123_v16  ;;  %v92_v33 = vmul.f32 %v84_v26, %v79_v17 }
  0x84   :  { %v144_v38 = vadd.f32 %v136_v32, %v92_v33 }
  0x85   :  { %v64_v19 = vpop.permute.xlu0 %63 }
  0x86   :  { %v69_v20 = vpop.permute.xlu1 %68  ;;  %v89_v44 = vmul.f32 %v84_v26, %v64_v19 }
  0x87   :  { %v90_v43 = vmul.f32 %v84_v26, %v69_v20 }
  0x8a   :  { %v111_v24 = vpop.permute.xlu0 %110 }
  0x8b   :  { %v115_v27 = vpop.permute.xlu1 %114  ;;  %v133_v45 = vmul.f32 %v128_v25, %v111_v24  ;;  %v477_v24 = vld [vmem:[%s626_s2 + $0x8] sm:$0xff]  }
  0x8c   :  { %v134_v42 = vmul.f32 %v128_v25, %v115_v27  ;;  %v538_v27 = vmov 0.0  }
  0x8d   :  { %v141_v50 = vadd.f32 %v133_v45, %v89_v44  ;;  %440 = vmatprep.subr.bf16.mxu1 %v538_v27  ;;  %448 = vmatprep.mubr.msk.bf16.mxu1 %vm539_vm1, %v538_v27 }
  0x8e   :  { %v103_v28 = vpop.permute.xlu0 %102  ;;  %v142_v48 = vadd.f32 %v134_v42, %v90_v43 }
  0x8f   :  { %v131_v61 = vmul.f32 %v128_v25, %v103_v28  ;;  %v40_v28 = vld [vmem:[%s628_s4] sm:$0x3] }
  0x90   :  { %v171_v31 = vpop.permute.xlu1 %170  ;;  %341 = vperm.xlu1 %474, %v40_v28  }
  0x91   :  { %v183_v36 = vadd.f32 %v171_v31, %v143_v35 }
  0x92   :  { %v95_v34 = vpop.permute.xlu0 %94 }
  0x93   :  { %480 = vtanh.f32 %v183_v36  ;;  %v129_v9 = vmul.f32 %v128_v25, %v95_v34 }
  0x95   :  { %v54_v37 = vpop.permute.xlu1 %53 }
  0x96   :  { %v87_v62 = vmul.f32 %v84_v26, %v54_v37 }
  0x97   :  { %v175_v39 = vpop.permute.xlu0 %174 }
  0x98   :  { %v184_v40 = vadd.f32 %v175_v39, %v144_v38  ;;  %v139_v5 = vadd.f32 %v131_v61, %v87_v62 }
  0x99   :  { %v59_v41 = vpop.permute.xlu1 %58 }
  0x9a   :  { %482 = vtanh.f32 %v184_v40  ;;  %v88_v59 = vmul.f32 %v84_v26, %v59_v41 }
  0x9b   :  { %v167_v46 = vpop.permute.xlu0 %166 }
  0x9c   :  { %v182_v49 = vadd.f32 %v167_v46, %v142_v48 }
  0x9e   :  { %v107_v47 = vpop.permute.xlu1 %106  ;;  %484 = vtanh.f32 %v182_v49 }
  0x9f   :  { %v132_v57 = vmul.f32 %v128_v25, %v107_v47  ;;  %v159_v63 = vpop.permute.xlu0 %158 }
  0xa0   :  { %v481_v53 = vpop.eup %480 }
  0xa1   :  { %v140_v60 = vadd.f32 %v132_v57, %v88_v59 }
  0xa3   :  { %v163_v51 = vpop.permute.xlu1 %162  ;;  %v180_v3 = vadd.f32 %v159_v63, %v140_v60 }
  0xa4   :  { %v181_v52 = vadd.f32 %v163_v51, %v141_v50  ;;  %v223_v29 = vpop.permute.xlu0 %222 }
  0xa6   :  { %486 = vtanh.f32 %v181_v52 }
  0xa7   :  { %v483_v54 = vpop.eup %482  ;;  %488 = vtanh.f32 %v180_v3 }
  0xa8   :  { %v44_v55 = vpop.permute.xlu1 %43  ;;  %v196_v56 = vpack.c.bf16 %v483_v54, %v481_v53  ;;  %v219_v34 = vpop.permute.xlu0 %218 }
  0xa9   :  { %v85_v6 = vmul.f32 %v84_v26, %v44_v55 }
  0xaa   :  { %424 = vmatprep.subr.bf16.mxu0 %v196_v56 }
  0xab   :  { %425 = vmatpush3.bf16.msra.mxu0 %v196_v56  ;;  %v485_v1 = vpop.eup %484  ;;  %v137_v11 = vadd.f32 %v129_v9, %v85_v6 }
  0xac   :  { %v49_v58 = vpop.permute.xlu1 %48  ;;  %v211_v40 = vpop.permute.xlu0 %210 }
  0xad   :  { %v86_v13 = vmul.f32 %v84_v26, %v49_v58  ;;  %v479_v26 = vld [vmem:[%s626_s2 + $0x18] sm:$0xff]  }
  0xb0   :  { %v203_v48 = vpop.permute.xlu0 %202 }
  0xb1   :  { %v99_v0 = vpop.permute.xlu1 %98 }
  0xb2   :  { %v130_v10 = vmul.f32 %v128_v25, %v99_v0  ;;  %v478_v25 = vld [vmem:[%s626_s2 + $0x10] sm:$0xff]  }
  0xb3   :  { %v487_v2 = vpop.eup %486 }
  0xb4   :  { %v195_v4 = vpack.c.bf16 %v485_v1, %v487_v2  ;;  %v138_v15 = vadd.f32 %v130_v10, %v86_v13  ;;  %v489_v18 = vpop.eup %488  ;;  %v39_v1 = vld [vmem:[%s627_s3] sm:$0x1] }
  0xb6   :  { %426 = vmatprep.subr.bf16.mxu0 %v195_v4  ;;  %v155_v7 = vpop.permute.xlu1 %154 }
  0xb7   :  { %v179_v8 = vadd.f32 %v155_v7, %v139_v5  ;;  %427 = vmatpush3.bf16.msra.mxu0 %v195_v4 }
  0xb9   :  { %490 = vtanh.f32 %v179_v8 }
  0xba   :  { %v147_v12 = vpop.permute.xlu1 %146 }
  0xbb   :  { %v177_v14 = vadd.f32 %v147_v12, %v137_v11 }
  0xbd   :  { %492 = vtanh.f32 %v177_v14 }
  0xbe   :  { %v151_v16 = vpop.permute.xlu1 %150 }
  0xbf   :  { %v178_v17 = vadd.f32 %v151_v16, %v138_v15 }
  0xc1   :  { %494 = vtanh.f32 %v178_v17 }
  0xc3   :  { %v227_v31 = vpop.permute.xlu1 %226 }
  0xc6   :  { %v491_v19 = vpop.eup %490 }
  0xc7   :  { %v194_v20 = vpack.c.bf16 %v489_v18, %v491_v19  ;;  %v215_v36 = vpop.permute.xlu1 %214 }
  0xc9   :  { %428 = vmatprep.subr.bf16.mxu0 %v194_v20 }
  0xca   :  { %429 = vmatpush3.bf16.msra.mxu0 %v194_v20  ;;  %v493_v21 = vpop.eup %492 }
  0xcb   :  { %v207_v43 = vpop.permute.xlu1 %206 }
  0xce   :  { %v495_v22 = vpop.eup %494 }
  0xcf   :  { %v193_v23 = vpack.c.bf16 %v495_v22, %v493_v21  ;;  %v199_v50 = vpop.permute.xlu1 %198 }
  0xd1   :  { %430 = vmatprep.subr.bf16.mxu0 %v193_v23 }
  0xd2   :  { %431 = vmatpush3.bf16.msra.mxu0 %v193_v23 }
  0xd5   :  { %433 = vmatmul.mubr.msk.bf16.vlgmr.msra.gmra.mxu0 %vm249_vm0, %v477_v24 }
  0xd6   :  { %436 = vmatprep.mubr.msk.bf16.mxu0 %vm249_vm0, %v478_v25 }
  0xdd   :  { %437 = vmatmul.mubr.msk.bf16.gmra.mxu0 %vm249_vm0, %v479_v26 }
 0x10b   :  { %v342_v2 = vpop.permute.xlu1 %341 }
 0x195   :  { %v434_v30 = vpop.f32.mrf.mxu0 }
 0x196   :  { %v305_v49 = vadd.f32 %v434_v30, %v207_v43 }
 0x197   :  { %v296_v32 = vpop.f32.mrf.mxu0 }
 0x198   :  { %v297_v52 = vadd.f32 %v296_v32, %v199_v50 }
 0x199   :  { %v435_v33 = vpop.f32.mrf.mxu0 }
 0x19a   :  { %v308_v47 = vadd.f32 %v435_v33, %v211_v40 }
 0x19b   :  { %v299_v35 = vpop.f32.mrf.mxu0 }
 0x19c   :  { %v300_v51 = vadd.f32 %v299_v35, %v203_v48 }
 0x19d   :  { %v438_v37 = vpop.f32.mrf.mxu0 }
 0x19e   :  { %v321_v38 = vadd.f32 %v438_v37, %v223_v29 }
 0x19f   :  { %v312_v39 = vpop.f32.mrf.mxu0 }
 0x1a0   :  { %496 = vtanh.f32 %v321_v38  ;;  %v313_v45 = vadd.f32 %v312_v39, %v215_v36 }
 0x1a1   :  { %v439_v41 = vpop.f32.mrf.mxu0 }
 0x1a2   :  { %v324_v42 = vadd.f32 %v439_v41, %v227_v31 }
 0x1a3   :  { %v315_v44 = vpop.f32.mrf.mxu0 }
 0x1a4   :  { %498 = vtanh.f32 %v324_v42  ;;  %v316_v46 = vadd.f32 %v315_v44, %v219_v34 }
 0x1a6   :  { %500 = vtanh.f32 %v316_v46 }
 0x1a7   :  { %502 = vtanh.f32 %v313_v45 }
 0x1a8   :  { %504 = vtanh.f32 %v308_v47 }
 0x1a9   :  { %506 = vtanh.f32 %v305_v49 }
 0x1aa   :  { %508 = vtanh.f32 %v300_v51 }
 0x1ab   :  { %510 = vtanh.f32 %v297_v52 }
 0x1ad   :  { %v497_v53 = vpop.eup %496 }
 0x1b1   :  { %v499_v54 = vpop.eup %498 }
 0x1b2   :  { %v338_v55 = vpack.c.bf16 %v499_v54, %v497_v53 }
 0x1b3   :  { %v501_v56 = vpop.eup %500 }
 0x1b4   :  { %441 = vmatpush3.bf16.msra.mxu1 %v338_v55  ;;  %v503_v57 = vpop.eup %502 }
 0x1b5   :  { %442 = vmatprep.subr.bf16.mxu1 %v538_v27  ;;  %v337_v58 = vpack.c.bf16 %v501_v56, %v503_v57  ;;  %v505_v59 = vpop.eup %504 }
 0x1b6   :  { %v507_v60 = vpop.eup %506 }
 0x1b7   :  { %v336_v61 = vpack.c.bf16 %v505_v59, %v507_v60  ;;  %v509_v62 = vpop.eup %508 }
 0x1b8   :  { %443 = vmatpush3.bf16.msra.mxu1 %v337_v58  ;;  %v511_v63 = vpop.eup %510 }
 0x1b9   :  { %444 = vmatprep.subr.bf16.mxu1 %v538_v27  ;;  %v335_v0 = vpack.c.bf16 %v509_v62, %v511_v63 }
 0x1bc   :  { %445 = vmatpush3.bf16.msra.mxu1 %v336_v61 }
 0x1bd   :  { %446 = vmatprep.subr.bf16.mxu1 %v538_v27 }
 0x1c0   :  { %447 = vmatpush3.bf16.msra.mxu1 %v335_v0 }
 0x1c3   :  { %449 = vmatmul.mubr.msk.bf16.vlgmr.msra.gmra.mxu1 %vm249_vm0, %v39_v1 }
 0x283   :  { %v381_v3 = vpop.f32.mrf.mxu1 }
 0x284   :  { %v382_v4 = vadd.f32 %v381_v3, %v342_v2 }
 0x285   :  { %v450_v5 = vpop.f32.mrf.mxu1 }
 0x286   :  { %387 = vst [vmem:[#allocation2] sm:$0x3] %v382_v4 }
 0x287   :  { %v384_v6 = vpop.f32.mrf.mxu1 }
 0x288   :  { %523 = shalt.err (!%p520_p4)
}
 0x289   :  { %397 = dma.vmem_to_hbm [thread:$0]  %s395_s20, 32, %s629_s5, [#allocation3]   ;;  %v451_v7 = vpop.f32.mrf.mxu1 }
 0x28a   :  { %532 = dma.done.wait [#allocation3], 32  }
 0x28b   :  { %533 = vsyncadd [#allocation3], 4294967264 }
 0x28c   :  { %401 = vsyncpa [#allocation3], 1 }

</bundles_post_ra>
